<compile_context>
chip_gen: v7x
topology: tpu7x:2x2x1
jax: 0.10.0
libtpu: 0.0.40
codegen_flags: <defaults>
</compile_context>

<pallas_src>
import jax
import jax.numpy as jnp
from jax import lax
from jax.experimental import pallas as pl
from jax.experimental.pallas import tpu as pltpu


def _ppo_critic_kernel(obs_ref, w1_ref, b1_ref, w2_ref, b2_ref, wv_ref, bv_ref,
                       out_ref):
    # obs arrives in its source dtype (usually f32); cast to the bf16 MXU
    # operand dtype on the (idle) VPU here instead of a wrapper-side HBM pass.
    x = obs_ref[...].astype(w1_ref.dtype)                       # (tb, D) bf16

    # Feature extractor in (feature, batch) orientation so intermediates keep
    # the batch on the 128-lane axis (lane-dense vregs / VMEM).
    # h1 = w1^T @ obs^T : contract D -> (H, tb)
    h1 = lax.dot_general(w1_ref[...], x,
                         dimension_numbers=(((0,), (1,)), ((), ())),
                         preferred_element_type=jnp.float32)
    h1 = jnp.maximum(h1 + b1_ref[...], 0.0)                     # (H, tb) f32
    # h2 = w2^T @ h1 : contract H -> (H, tb)
    h2 = lax.dot_general(w2_ref[...], h1.astype(w2_ref.dtype),
                         dimension_numbers=(((0,), (0,)), ((), ())),
                         preferred_element_type=jnp.float32)
    h2 = jnp.maximum(h2 + b2_ref[...], 0.0)                     # (H, tb) f32

    # Value head Linear(H, 1): (8, H) x (H, tb) -> (8, tb). Row 0 of wv_ref is
    # the real weight (rows 1..7 zero padding for a full sublane tile). The
    # result lands with batch on the LANE axis -> unmasked lane-dense store.
    v = lax.dot_general(wv_ref[...], h2.astype(wv_ref.dtype),
                        dimension_numbers=(((1,), (0,)), ((), ())),
                        preferred_element_type=jnp.float32)
    out_ref[...] = (v[0:1, :] + bv_ref[...]).astype(out_ref.dtype)


def _round_up(x, m):
    return ((x + m - 1) // m) * m


def ppo_critic_forward(obs, params, *, batch_tile=None,
                       compute_dtype=jnp.bfloat16):
    """obs: (B, OBS_DIM). Returns (B,) float32 (the .squeeze(dim=-1) output)."""
    B, D = obs.shape
    w1, b1, w2, b2, wv, bv = (params["w1"], params["b1"], params["w2"],
                              params["b2"], params["wv"], params["bv"])
    H = w1.shape[1]

    # ---- batch tile ----------------------------------------------------
    # Big tiles amortize the ~0.35us/step pipeline overhead; cap at ceil(B/2)
    # rounded to 128 so grid >= 2 (both v7x TensorCores get a "parallel" slice).
    if batch_tile is not None:
        tb = max(128, _round_up(int(batch_tile), 128))
    else:
        half = _round_up(pl.cdiv(B, 2), 128)
        tb = int(max(128, min(8192, half)))
    grid = pl.cdiv(B, tb)

    # ---- small, VMEM-resident parameters -------------------------------
    w1_c = w1.astype(compute_dtype)                     # (D, H)
    w2_c = w2.astype(compute_dtype)                     # (H, H)
    b1_r = b1.reshape(H, 1).astype(jnp.float32)         # (H, 1) for (H, tb)
    b2_r = b2.reshape(H, 1).astype(jnp.float32)
    wv_row = jnp.zeros((8, H), compute_dtype).at[0, :].set(
        wv.reshape(H).astype(compute_dtype))            # (8, H), row 0 = wv^T
    bv_r = bv.reshape(1, 1).astype(jnp.float32)

    def resident(arr):  # whole array, constant block index -> fetched once
        nd = arr.ndim
        return pl.BlockSpec(arr.shape, lambda i, _nd=nd: (0,) * _nd)

    # ---- VMEM budget (v7x has 64 MiB physical; v5e default scope is 16 MiB) -
    lane = 128
    itemsize = jnp.dtype(obs.dtype).itemsize
    obs_block = tb * max(D, lane) * itemsize            # lane-padded obs block
    out_block = tb * 4
    inter = 2 * max(H, 8) * tb * 4                      # h1 + h2 (lane-dense)
    vmem_budget = 2 * (obs_block + out_block) + inter + (8 << 20)
    vmem_budget = int(min(max(vmem_budget, 32 << 20), 64 << 20))

    weight_bytes = sum(int(a.size) * jnp.dtype(a.dtype).itemsize
                       for a in (w1_c, b1_r, w2_c, b2_r, wv_row, bv_r))
    cost = pl.CostEstimate(
        flops=2 * B * (D * H + H * H + H),
        transcendentals=0,
        bytes_accessed=B * D * itemsize + B * 4 + weight_bytes)

    out = pl.pallas_call(
        _ppo_critic_kernel,
        out_shape=jax.ShapeDtypeStruct((1, B), jnp.float32),
        grid_spec=pl.GridSpec(
            grid=(grid,),
            in_specs=[
                # Streamed obs tile (Pallas clips the ragged tail block).
                pl.BlockSpec((tb, D), lambda i: (i, 0)),
                resident(w1_c), resident(b1_r),
                resident(w2_c), resident(b2_r),
                resident(wv_row), resident(bv_r),
            ],
            # Lane-dense output: one (1, tb) chunk of the single (1, B) row.
            out_specs=pl.BlockSpec((1, tb), lambda i: (0, i)),
        ),
        compiler_params=pltpu.CompilerParams(
            dimension_semantics=("parallel",),
            vmem_limit_bytes=vmem_budget),
        cost_estimate=cost,
    )(obs, w1_c, b1_r, w2_c, b2_r, wv_row, bv_r)

    return out.reshape(B)   # matches .squeeze(dim=-1)


def init_params(key, obs_dim, hidden):
    """Deterministic synthetic parameter init (nn.Linear-like uniform)."""
    ks = jax.random.split(key, 6)

    def lin(kw, kb, fan_in, fan_out):
        bound = 1.0 / jnp.sqrt(fan_in)
        w = jax.random.uniform(kw, (fan_in, fan_out), jnp.float32, -bound, bound)
        b = jax.random.uniform(kb, (1, fan_out), jnp.float32, -bound, bound)
        return w, b

    w1, b1 = lin(ks[0], ks[1], obs_dim, hidden)
    w2, b2 = lin(ks[2], ks[3], hidden, hidden)
    wv, bv = lin(ks[4], ks[5], hidden, 1)
    return dict(w1=w1, b1=b1, w2=w2, b2=b2, wv=wv, bv=bv)


def _reference(obs, p, compute_dtype=jnp.bfloat16):
    """Pure-JAX reference using the same bf16-operand / f32-accumulate math."""
    # TODO(synk): intermediates are rounded to bf16 between matmuls (matching
    # the kernel); the original f32 PyTorch module keeps f32 throughout.
    cd = compute_dtype
    h1 = jnp.dot(obs.astype(cd), p["w1"].astype(cd),
                 preferred_element_type=jnp.float32) + p["b1"]
    h1 = jnp.maximum(h1, 0.0)
    h2 = jnp.dot(h1.astype(cd), p["w2"].astype(cd),
                 preferred_element_type=jnp.float32) + p["b2"]
    h2 = jnp.maximum(h2, 0.0)
    v = jnp.dot(h2.astype(cd), p["wv"].astype(cd),
                preferred_element_type=jnp.float32) + p["bv"]
    return jnp.squeeze(v, axis=-1)


if __name__ == "__main__":
    # Small shapes, but big enough to exercise tiling: tb=256, grid=2.
    B, OBS_DIM, HIDDEN = 512, 16, 32
    key = jax.random.PRNGKey(0)
    k_obs, k_par = jax.random.split(key)

    obs = jax.random.normal(k_obs, (B, OBS_DIM), jnp.float32)
    params = init_params(k_par, OBS_DIM, HIDDEN)

    value = jax.block_until_ready(ppo_critic_forward(obs, params))
    ref = _reference(obs, params)
    assert value.shape == (B,)
    assert jnp.allclose(value, ref, atol=1e-3, rtol=1e-3), \
        float(jnp.max(jnp.abs(value - ref)))

    # Ragged batch: exercises the no-pad path (Pallas clips the tail block).
    B2 = 300
    obs2 = jax.random.normal(jax.random.PRNGKey(1), (B2, OBS_DIM), jnp.float32)
    value2 = jax.block_until_ready(ppo_critic_forward(obs2, params))
    ref2 = _reference(obs2, params)
    assert value2.shape == (B2,)
    assert jnp.allclose(value2, ref2, atol=1e-3, rtol=1e-3), \
        float(jnp.max(jnp.abs(value2 - ref2)))

    print("KERNEL_OK")
</pallas_src>

<mosaic_0001>
module attributes {stable_mosaic.version = 11 : i64} {
  func.func @_ppo_critic_kernel(%arg0: i32, %arg1: memref<256x16xf32, #tpu.memory_space<vmem>>, %arg2: memref<16x32xbf16, #tpu.memory_space<vmem>>, %arg3: memref<32x1xf32, #tpu.memory_space<vmem>>, %arg4: memref<32x32xbf16, #tpu.memory_space<vmem>>, %arg5: memref<32x1xf32, #tpu.memory_space<vmem>>, %arg6: memref<8x32xbf16, #tpu.memory_space<vmem>>, %arg7: memref<1x1xf32, #tpu.memory_space<vmem>>, %arg8: memref<1x256xf32, #tpu.memory_space<vmem>>) attributes {dimension_semantics = [#tpu.dimension_semantics<parallel>], iteration_bounds = array<i64: 2>, scalar_prefetch = 0 : i64, scratch_operands = 0 : i64, tpu.core_type = #tpu.core_type<tc>, window_params = [{transform_indices = @transform_0, window_bounds = array<i64: 256, 16>}, {pipeline_mode = #tpu.pipeline_mode<synchronous>, transform_indices = @transform_1, window_bounds = array<i64: 16, 32>}, {pipeline_mode = #tpu.pipeline_mode<synchronous>, transform_indices = @transform_2, window_bounds = array<i64: 32, 1>}, {pipeline_mode = #tpu.pipeline_mode<synchronous>, transform_indices = @transform_3, window_bounds = array<i64: 32, 32>}, {pipeline_mode = #tpu.pipeline_mode<synchronous>, transform_indices = @transform_4, window_bounds = array<i64: 32, 1>}, {pipeline_mode = #tpu.pipeline_mode<synchronous>, transform_indices = @transform_5, window_bounds = array<i64: 8, 32>}, {pipeline_mode = #tpu.pipeline_mode<synchronous>, transform_indices = @transform_6, window_bounds = array<i64: 1, 1>}, {transform_indices = @transform_7, window_bounds = array<i64: 1, 256>}]} {
    %c0 = arith.constant 0 : index
    %c0_0 = arith.constant 0 : index
    %0 = vector.load %arg1[%c0, %c0_0] : memref<256x16xf32, #tpu.memory_space<vmem>>, vector<256x16xf32>
    %1 = arith.truncf %0 : vector<256x16xf32> to vector<256x16xbf16>
    %c0_1 = arith.constant 0 : index
    %c0_2 = arith.constant 0 : index
    %2 = vector.load %arg2[%c0_1, %c0_2] : memref<16x32xbf16, #tpu.memory_space<vmem>>, vector<16x32xbf16>
    %cst = arith.constant dense<0.000000e+00> : vector<32x256xf32>
    %3 = tpu.matmul %2, %1, %cst {dimension_numbers = #tpu.dot_dimension_numbers<[0], [1], [1], [0], [0, 1, 1, 0], [], []>} : vector<16x32xbf16>, vector<256x16xbf16>, vector<32x256xf32> -> vector<32x256xf32>
    %c0_3 = arith.constant 0 : index
    %c0_4 = arith.constant 0 : index
    %4 = vector.load %arg3[%c0_3, %c0_4] : memref<32x1xf32, #tpu.memory_space<vmem>>, vector<32x1xf32>
    %5 = vector.broadcast %4 : vector<32x1xf32> to vector<32x256xf32>
    %6 = arith.addf %3, %5 : vector<32x256xf32>
    %cst_5 = arith.constant 0.000000e+00 : f32
    %7 = vector.broadcast %cst_5 : f32 to vector<32x256xf32>
    %8 = arith.maximumf %6, %7 : vector<32x256xf32>
    %c0_6 = arith.constant 0 : index
    %c0_7 = arith.constant 0 : index
    %9 = vector.load %arg4[%c0_6, %c0_7] : memref<32x32xbf16, #tpu.memory_space<vmem>>, vector<32x32xbf16>
    %10 = arith.truncf %8 : vector<32x256xf32> to vector<32x256xbf16>
    %cst_8 = arith.constant dense<0.000000e+00> : vector<32x256xf32>
    %11 = tpu.matmul %9, %10, %cst_8 {dimension_numbers = #tpu.dot_dimension_numbers<[0], [0], [1], [1], [0, 1, 1, 1], [], []>} : vector<32x32xbf16>, vector<32x256xbf16>, vector<32x256xf32> -> vector<32x256xf32>
    %c0_9 = arith.constant 0 : index
    %c0_10 = arith.constant 0 : index
    %12 = vector.load %arg5[%c0_9, %c0_10] : memref<32x1xf32, #tpu.memory_space<vmem>>, vector<32x1xf32>
    %13 = vector.broadcast %12 : vector<32x1xf32> to vector<32x256xf32>
    %14 = arith.addf %11, %13 : vector<32x256xf32>
    %cst_11 = arith.constant 0.000000e+00 : f32
    %15 = vector.broadcast %cst_11 : f32 to vector<32x256xf32>
    %16 = arith.maximumf %14, %15 : vector<32x256xf32>
    %c0_12 = arith.constant 0 : index
    %c0_13 = arith.constant 0 : index
    %17 = vector.load %arg6[%c0_12, %c0_13] : memref<8x32xbf16, #tpu.memory_space<vmem>>, vector<8x32xbf16>
    %18 = arith.truncf %16 : vector<32x256xf32> to vector<32x256xbf16>
    %cst_14 = arith.constant dense<0.000000e+00> : vector<8x256xf32>
    %19 = tpu.matmul %17, %18, %cst_14 {dimension_numbers = #tpu.dot_dimension_numbers<[1], [0], [0], [1], [0, 0, 1, 1], [], []>} : vector<8x32xbf16>, vector<32x256xbf16>, vector<8x256xf32> -> vector<8x256xf32>
    %20 = vector.extract_strided_slice %19 {offsets = [0, 0], sizes = [1, 256], strides = [1, 1]} : vector<8x256xf32> to vector<1x256xf32>
    %c0_15 = arith.constant 0 : index
    %c0_16 = arith.constant 0 : index
    %21 = vector.load %arg7[%c0_15, %c0_16] : memref<1x1xf32, #tpu.memory_space<vmem>>, vector<1x1xf32>
    %22 = vector.broadcast %21 : vector<1x1xf32> to vector<1x256xf32>
    %23 = arith.addf %20, %22 : vector<1x256xf32>
    %c0_17 = arith.constant 0 : index
    %c0_18 = arith.constant 0 : index
    %24 = vector.load %arg8[%c0_17, %c0_18] : memref<1x256xf32, #tpu.memory_space<vmem>>, vector<1x256xf32>
    tpu.vector_store %arg8[%c0_17, %c0_18], %23 {strides = array<i32>} : memref<1x256xf32, #tpu.memory_space<vmem>>, vector<1x256xf32>,
    return
  }
  func.func @transform_0(%arg0: i32) -> (i32, i32) {
    %c0_i32 = arith.constant 0 : i32
    %c0_i32_0 = arith.constant 0 : i32
    return %arg0, %c0_i32 : i32, i32
  }
  func.func @transform_1(%arg0: i32) -> (i32, i32) {
    %c0_i32 = arith.constant 0 : i32
    %c0_i32_0 = arith.constant 0 : i32
    %c0_i32_1 = arith.constant 0 : i32
    return %c0_i32, %c0_i32_0 : i32, i32
  }
  func.func @transform_2(%arg0: i32) -> (i32, i32) {
    %c0_i32 = arith.constant 0 : i32
    %c0_i32_0 = arith.constant 0 : i32
    %c0_i32_1 = arith.constant 0 : i32
    return %c0_i32, %c0_i32_0 : i32, i32
  }
  func.func @transform_3(%arg0: i32) -> (i32, i32) {
    %c0_i32 = arith.constant 0 : i32
    %c0_i32_0 = arith.constant 0 : i32
    %c0_i32_1 = arith.constant 0 : i32
    return %c0_i32, %c0_i32_0 : i32, i32
  }
  func.func @transform_4(%arg0: i32) -> (i32, i32) {
    %c0_i32 = arith.constant 0 : i32
    %c0_i32_0 = arith.constant 0 : i32
    %c0_i32_1 = arith.constant 0 : i32
    return %c0_i32, %c0_i32_0 : i32, i32
  }
  func.func @transform_5(%arg0: i32) -> (i32, i32) {
    %c0_i32 = arith.constant 0 : i32
    %c0_i32_0 = arith.constant 0 : i32
    %c0_i32_1 = arith.constant 0 : i32
    return %c0_i32, %c0_i32_0 : i32, i32
  }
  func.func @transform_6(%arg0: i32) -> (i32, i32) {
    %c0_i32 = arith.constant 0 : i32
    %c0_i32_0 = arith.constant 0 : i32
    %c0_i32_1 = arith.constant 0 : i32
    return %c0_i32, %c0_i32_0 : i32, i32
  }
  func.func @transform_7(%arg0: i32) -> (i32, i32) {
    %c0_i32 = arith.constant 0 : i32
    %c0_i32_0 = arith.constant 0 : i32
    return %c0_i32, %arg0 : i32, i32
  }
}

</mosaic_0001>

<bundles_post_ra>
// kernel: tpu_custom_call.1
= control target key start
LH: loop header
LB: loop body
LE: loop exit
PB: predicated region body
PF: predicated region fallthrough
CT: control target
= control target key end

     0   :  { %s1183_s0 = inlined_call_operand.vmem [shape: f32[512,16], index: 0, kind: input, shape index: {}]   ;;  %s1184_s1 = inlined_call_operand.vmem [shape: bf16[16,32], index: 1, kind: input, shape index: {}]   ;;  %s1185_s2 = inlined_call_operand.vmem [shape: f32[32,1], index: 2, kind: input, shape index: {}]   ;;  %s1186_s3 = inlined_call_operand.vmem [shape: bf16[32,32], index: 3, kind: input, shape index: {}]   ;;  %s1187_s4 = inlined_call_operand.vmem [shape: f32[32,1], index: 4, kind: input, shape index: {}]   ;;  %s1188_s5 = inlined_call_operand.vmem [shape: bf16[8,32], index: 5, kind: input, shape index: {}]   ;;  %s1189_s6 = inlined_call_operand.<no memory space> [shape: f32[1,1], index: 6, kind: input, shape index: {}]   ;;  %s1190_s7 = inlined_call_operand.hbm [shape: f32[1,512], index: 7, kind: output, shape index: {}]  }
   0x1   :  { %v12_v0 = vstv %s1189_s6 }
   0x2   :  { %13 = vst [vmem:[#allocation2] sm:$0x1] %v12_v0 }
   0x3   :  { %14 = vsyncpa [#allocation4], 0 }
   0x4   :  { %16 = vsyncpa [#allocation4 + $0x1], 0  ;;  %s986_s26 = smov 0   ;;  %s988_s27 = smov 0  }
   0x5   :  { %s990_s28 = smov 0   ;;  %s992_s29 = smov 0  }
   0x6 LB: > { %s780_s6 = sadd.s32 4294967295, %s938_s29   ;;  %s781_s30 = sadd.s32 4294967294, %s938_s29   ;;  %s938_s29 = sphi %s992_s29, %s1196_s29   ;;  %s934_s28 = sphi %s990_s28, %s1195_s28   ;;  %s930_s27 = sphi %s988_s27, %s1194_s27   ;;  %s926_s26 = sphi %s986_s26, %s1193_s26  }
   0x7   : > { %s1009_s8 = sadd.s32 1, %s938_s29   ;;  %s181_s9 = sadd.s32 1, %s934_s28 }
   0x8   : > { %s178_s10 = ssub.s32 %s938_s29, %s1009_s8  ;;  %p191_p0 = scmp.ne.s32.totalorder %s934_s28, %s930_s27 }
   0x9   : > { %p179_p1 = scmp.eq.s32.totalorder %s178_s10, 0  ;;  %p192_p2 = scmp.eq.s32.totalorder %s780_s6, 1 }
   0xa   : > { %p197_p3 = scmp.ne.s32.totalorder %s930_s27, %s926_s26  ;;  %p198_p4 = scmp.eq.s32.totalorder %s781_s30, 1 }
   0xb   : > { %s1019_s11 = scalar_select %p179_p1, %s934_s28, %s181_s9  }
   0xc   : > { %p1021_p5 = por %p192_p2, %p191_p0  ;;  %p1025_p6 = por %p198_p4, %p197_p3 }
   0xd   : > { %p784_p7 = scmp.ge.s32.totalorder %s938_s29, 1  ;;  %p243_p8 = scmp.lt.s32.totalorder %s938_s29, 3 }
   0xf   : > { %p244_p9 = pnand %p784_p7, %p243_p8 }
  0x10   : > { %v873_v1 = vld [vmem:[%s1184_s1] sm:$0xff] (!%p244_p9)   ;;  %s1034_s16 = sshll.u32 (!%p244_p9), %s780_s6, 5  ;;  %v334_v2 = vld [vmem:[%s1185_s2 + $0x8] sm:$0xff] (!%p244_p9)  ;;  %v940_v3 = vmov (!%p244_p9), 0   ;;  %v335_v4 = vld [vmem:[%s1185_s2 + $0x10] sm:$0xff] (!%p244_p9)  ;;  %vm379_vm0 = vcmask (!%p244_p9), 130048  }
  0x11   : > { %247 = sbr.rel (%p244_p9) target bundleno = 822 (0x336), region = 48  ;;  %p276_p10 = scmp.lt.s32.totalorder (!%p244_p9), %s1034_s16, 63  ;;  %363 = vxpose.xlu0.c.b16.start.end [1/1] (short) (narrow) (!%p244_p9), %v873_v1, 32  ;;  %872 = vset.pattern.permute.xlu1 (!%p244_p9), %v940_v3  ;;  %v336_v5 = vld [vmem:[%s1185_s2 + $0x18] sm:$0xff] (!%p244_p9)  ;;  %v333_v18 = vld [vmem:[%s1185_s2] sm:$0xff] (!%p244_p9)  ;;  %v504_v27 = vld [vmem:[%s1187_s4 + $0x8] sm:$0xff] (!%p244_p9) }
  0x12   : > { %344 = vperm.xlu1 (!%p244_p9), %872, %v334_v2   ;;  %594 = vmatprep.mubr.bf16.mxu1 (!%p244_p9), %v940_v3  ;;  %v503_v22 = vld [vmem:[%s1187_s4] sm:$0xff] (!%p244_p9)  ;;  %v505_v31 = vld [vmem:[%s1187_s4 + $0x10] sm:$0xff] (!%p244_p9)  ;;  %v506_v36 = vld [vmem:[%s1187_s4 + $0x18] sm:$0xff] (!%p244_p9)  ;;  %vm555_vm1 = vcmask (!%p244_p9), 261120   ;;  %s272_s10 = sand.u32 (!%p244_p9), 1, %s930_s27   ;;  %s1141_s20 = scalar_lea.hbm (!%p244_p9), %s1190_s7, %s1034_s16 }
  0x13   : > { %v672_v40 = vld [vmem:[#allocation2] sm:$0x1] (!%p244_p9)  ;;  %v875_v56 = vld [vmem:[%s1186_s3 + $0x8] sm:$0xff] (!%p244_p9)   ;;  %s785_s14 = sshll.u32 (!%p244_p9), %s272_s10, 1  ;;  %s708_s21 = scalar_lea.sflag (!%p244_p9), [#allocation4], %s272_s10 }
  0x14   : > { %v874_v52 = vld [vmem:[%s1186_s3] sm:$0xff] (!%p244_p9)   ;;  %s274_s15 = scalar_lea.vmem (!%p244_p9), [#allocation3], %s785_s14  ;;  %s942_s23 = smov (!%p244_p9), [#allocation3]  }
  0x15   : > { %s722_s17 = sshll.u32 (!%p244_p9), %s274_s15, 4  ;;  %s880_s24 = sshll.u32 (!%p244_p9), %s942_s23, 4  ;;  %s1143_s17 = int_to_ptr.vmem [resolvable:$true] %s722_s17  ;;  %s881_s24 = int_to_ptr.vmem [resolvable:$false] %s880_s24 }
  0x16   : > { %349 = vperm.xlu1 (!%p244_p9), %872, %v335_v4   ;;  %s882_s6 = scalar_lea.vmem (!%p244_p9), %s881_s24, 64  ;;  %p883_p0 = scmp.lt.s32.totalorder (!%p244_p9), %s1143_s17, %s881_s24 }
  0x18   : > { %s277_s19 = scalar_select %p276_p10, %s1034_s16, 63 }
  0x1a   : > { %s787_s22 = sshll.u32 %s277_s19, 3  ;;  %871 = vset.pattern.permute.xlu0 %v940_v3  ;;  %354 = vperm.xlu1 %872, %v336_v5  }
  0x1b   : > { %s1049_s25 = scalar_lea.vmem %s1183_s0, %s787_s22  ;;  %s876_s22 = scalar_lea.vmem %s1143_s17, 32 }
  0x1c   : > { %v299_v6 = vld [vmem:[%s1049_s25 + $0x80] sm:$0xff]  ;;  %v300_v7 = vld [vmem:[%s1049_s25 + $0x88] sm:$0xff]  ;;  %v301_v11 = vld [vmem:[%s1049_s25 + $0x90] sm:$0xff]  ;;  %p877_p11 = scmp.ne.s32.totalorder %s1143_s17, %s876_s22  ;;  %p884_p1 = scmp.lt.s32.totalorder %s882_s6, %s876_s22 }
  0x1d   : > { %v283_v8 = vld [vmem:[%s1049_s25] sm:$0xff]  ;;  %v323_v9 = vpack.c.bf16 %v300_v7, %v299_v6  ;;  %v284_v10 = vld [vmem:[%s1049_s25 + $0x8] sm:$0xff]  ;;  %v302_v12 = vld [vmem:[%s1049_s25 + $0x98] sm:$0xff] }
  0x1e   : > { %v315_v13 = vpack.c.bf16 %v284_v10, %v283_v8  ;;  %v324_v14 = vpack.c.bf16 %v302_v12, %v301_v11  ;;  %v285_v15 = vld [vmem:[%s1049_s25 + $0x10] sm:$0xff]  ;;  %v286_v16 = vld [vmem:[%s1049_s25 + $0x18] sm:$0xff]  ;;  %v303_v20 = vld [vmem:[%s1049_s25 + $0xa0] sm:$0xff]  ;;  %339 = vperm.xlu0 %871, %v333_v18   ;;  %p878_p12 = pnand %p877_p11, %p1021_p5  ;;  %p885_p2 = por %p884_p1, %p883_p0 }
  0x1f   : > { %822 = vmatprep.subr.msk.bf16.mxu0 %vm379_vm0, %v323_v9  ;;  %v316_v19 = vpack.c.bf16 %v286_v16, %v285_v15  ;;  %v304_v21 = vld [vmem:[%s1049_s25 + $0xa8] sm:$0xff]  ;;  %v287_v25 = vld [vmem:[%s1049_s25 + $0x20] sm:$0xff]  ;;  %v305_v29 = vld [vmem:[%s1049_s25 + $0xb0] sm:$0xff] }
  0x20   : > { %v387_v17 = vsel %vm379_vm0, %v315_v13, 0  ;;  %v325_v24 = vpack.c.bf16 %v304_v21, %v303_v20  ;;  %v288_v26 = vld [vmem:[%s1049_s25 + $0x28] sm:$0xff]  ;;  %v306_v30 = vld [vmem:[%s1049_s25 + $0xb8] sm:$0xff]  ;;  %v289_v34 = vld [vmem:[%s1049_s25 + $0x30] sm:$0xff]  ;;  %p879_p13 = pneg %p878_p12 }
  0x21   : > { %803 = vmatpush3.bf16.xpose.msra.mxu0 %v387_v17  ;;  %v390_v23 = vsel %vm379_vm0, %v316_v19, 0  ;;  %v317_v28 = vpack.c.bf16 %v288_v26, %v287_v25  ;;  %v326_v33 = vpack.c.bf16 %v306_v30, %v305_v29  ;;  %v290_v35 = vld [vmem:[%s1049_s25 + $0x38] sm:$0xff]  ;;  %v307_v38 = vld [vmem:[%s1049_s25 + $0xc0] sm:$0xff]  ;;  %v308_v39 = vld [vmem:[%s1049_s25 + $0xc8] sm:$0xff] }
  0x22   : > { %823 = vmatprep.subr.msk.bf16.mxu0 %vm379_vm0, %v324_v14  ;;  %509 = vperm.xlu0 %871, %v503_v22   ;;  %v318_v37 = vpack.c.bf16 %v290_v35, %v289_v34  ;;  %v327_v42 = vpack.c.bf16 %v308_v39, %v307_v38  ;;  %v291_v43 = vld [vmem:[%s1049_s25 + $0x40] sm:$0xff]  ;;  %v292_v44 = vld [vmem:[%s1049_s25 + $0x48] sm:$0xff]  ;;  %v309_v46 = vld [vmem:[%s1049_s25 + $0xd0] sm:$0xff]  ;;  %p886_p3 = pnand %p885_p2, %p879_p13 }
  0x23   : > { %v393_v32 = vsel %vm379_vm0, %v317_v28, 0  ;;  %v319_v45 = vpack.c.bf16 %v292_v44, %v291_v43  ;;  %v310_v47 = vld [vmem:[%s1049_s25 + $0xd8] sm:$0xff]  ;;  %v293_v50 = vld [vmem:[%s1049_s25 + $0x50] sm:$0xff]  ;;  %v311_v54 = vld [vmem:[%s1049_s25 + $0xe0] sm:$0xff] }
  0x24   : > { %v396_v41 = vsel %vm379_vm0, %v318_v37, 0  ;;  %v328_v49 = vpack.c.bf16 %v310_v47, %v309_v46  ;;  %v294_v51 = vld [vmem:[%s1049_s25 + $0x58] sm:$0xff]  ;;  %v312_v55 = vld [vmem:[%s1049_s25 + $0xe8] sm:$0xff]  ;;  %v295_v59 = vld [vmem:[%s1049_s25 + $0x60] sm:$0xff] }
  0x25   : > { %v399_v48 = vsel %vm379_vm0, %v319_v45, 0  ;;  %v320_v53 = vpack.c.bf16 %v294_v51, %v293_v50  ;;  %v329_v58 = vpack.c.bf16 %v312_v55, %v311_v54  ;;  %v296_v60 = vld [vmem:[%s1049_s25 + $0x68] sm:$0xff]  ;;  %v313_v62 = vld [vmem:[%s1049_s25 + $0xf0] sm:$0xff]  ;;  %v314_v63 = vld [vmem:[%s1049_s25 + $0xf8] sm:$0xff] }
  0x26   : > { %514 = vperm.xlu0 %871, %v504_v27   ;;  %v321_v61 = vpack.c.bf16 %v296_v60, %v295_v59  ;;  %v330_v1 = vpack.c.bf16 %v314_v63, %v313_v62  ;;  %v297_v2 = vld [vmem:[%s1049_s25 + $0x70] sm:$0xff]  ;;  %v298_v4 = vld [vmem:[%s1049_s25 + $0x78] sm:$0xff] }
  0x27   : > { %v402_v57 = vsel %vm379_vm0, %v320_v53, 0  ;;  %v322_v5 = vpack.c.bf16 %v298_v4, %v297_v2 }
  0x28   : > { %v405_v0 = vsel %vm379_vm0, %v321_v61, 0 }
  0x29   : > { %805 = vmatpush3.bf16.xpose.msra.mxu0 %v390_v23  ;;  %v408_v6 = vsel %vm379_vm0, %v322_v5, 0 }
  0x2a   : > { %824 = vmatprep.subr.msk.bf16.mxu0 %vm379_vm0, %v325_v24  ;;  %519 = vperm.xlu0 %871, %v505_v31  }
  0x2e   : > { %524 = vperm.xlu0 %871, %v506_v36  }
  0x31   : > { %807 = vmatpush3.bf16.xpose.msra.mxu0 %v393_v32 }
  0x32   : > { %825 = vmatprep.subr.msk.bf16.mxu0 %vm379_vm0, %v326_v33  ;;  %675 = vperm.xlu0 %871, %v672_v40  }
  0x39   : > { %809 = vmatpush3.bf16.xpose.msra.mxu0 %v396_v41 }
  0x3a   : > { %826 = vmatprep.subr.msk.bf16.mxu0 %vm379_vm0, %v327_v42 }
  0x3d   : > { %539 = vxpose.xlu1.c.b16.start [1/2] (short) (narrow) %v874_v52, 32 }
  0x41   : > { %811 = vmatpush3.bf16.xpose.msra.mxu0 %v399_v48  ;;  %540 = vxpose.xlu1.c.b16.end [2/2] (short) (narrow) %v875_v56, 32 }
  0x42   : > { %827 = vmatprep.subr.msk.bf16.mxu0 %vm379_vm0, %v328_v49 }
  0x49   : > { %813 = vmatpush3.bf16.xpose.msra.mxu0 %v402_v57 }
  0x4a   : > { %828 = vmatprep.subr.msk.bf16.mxu0 %vm379_vm0, %v329_v58 }
  0x51   : > { %815 = vmatpush3.bf16.xpose.msra.mxu0 %v405_v0 }
  0x52   : > { %829 = vmatprep.subr.msk.bf16.mxu0 %vm379_vm0, %v330_v1 }
  0x59   : > { %817 = vmatpush3.bf16.xpose.msra.mxu0 %v408_v6 }
  0x77   : > { %v371_v7 = vpop.trf.xlu0 }
  0x78   : > { %818 = vmatprep.mubr.msk.bf16.mxu0 %vm379_vm0, %v371_v7 }
  0x79   : > { %819 = vmatmul.mubr.msk.bf16.vlgmr.msra.gmra.mrb[0].mxu0 %vm379_vm0, %v371_v7 }
  0x7b   : > { %v372_v8 = vpop.trf.xlu0 }
  0x7c   : > { %820 = vmatprep.mubr.msk.bf16.mxu0 %vm379_vm0, %v372_v8 }
  0x81   : > { %821 = vmatmul.mubr.msk.bf16.gmra.mrb[4].mxu0 %vm379_vm0, %v372_v8 }
  0x91   : > { %v345_v9 = vpop.permute.xlu1 %344 }
  0x95   : > { %v350_v18 = vpop.permute.xlu1 %349 }
  0x99   : > { %v355_v29 = vpop.permute.xlu1 %354 }
  0x9d   : > { %v340_v10 = vpop.permute.xlu0 %339 }
  0xa1   : > { %v510_v43 = vpop.permute.xlu0 %509 }
  0xa3   : > { %v547_v41 = vpop.trf.xlu1 }
  0xa5   : > { %v515_v44 = vpop.permute.xlu0 %514 }
  0xa7   : > { %v548_v42 = vpop.trf.xlu1 }
  0xa9   : > { %v520_v52 = vpop.permute.xlu0 %519 }
  0xad   : > { %v525_v62 = vpop.permute.xlu0 %524 }
 0x14c   : > { %v468_v11 = vpop.f32.mrb[0].mxu0 }
 0x14d   : > { %v469_v12 = vadd.f32 %v468_v11, %v340_v10  ;;  %v470_v13 = vpop.f32.mrb[1].mxu0  ;;  %v623_v11 = vld [vmem:[%s1188_s5] sm:$0xf] }
 0x14e   : > { %v471_v14 = vadd.f32 %v470_v13, %v340_v10  ;;  %v472_v15 = vpop.f32.mrb[2].mxu0 }
 0x14f   : > { %v473_v16 = vadd.f32 %v472_v15, %v345_v9  ;;  %v474_v17 = vpop.f32.mrb[3].mxu0  ;;  %v487_v20 = vmax.f32 %v469_v12, 0.0  ;;  %v678_v12 = vlaneseq }
 0x150   : > { %v475_v19 = vadd.f32 %v474_v17, %v345_v9  ;;  %v488_v22 = vmax.f32 %v471_v14, 0.0  ;;  %v941_v14 = vmov 1966171168   ;;  %v676_v17 = vpop.permute.xlu0 %675 }
 0x151   : > { %v489_v21 = vmax.f32 %v473_v16, 0.0  ;;  %v679_v13 = vshrl.u32 %v678_v12, 7  ;;  %v688_v15 = vunpack.c.l.s4 %v941_v14  ;;  %vm704_vm2 = vcmp.lt.s32.totalorder %v678_v12, 256 }
 0x152   : > { %v490_v23 = vmax.f32 %v475_v19, 0.0 }
 0x153   : > { %v499_v24 = vpack.c.bf16 %v489_v21, %v487_v20  ;;  %v680_v16 = vsub.s32 0, %v679_v13 }
 0x154   : > { %v478_v25 = vpop.f32.mrb[4].mxu0  ;;  %v500_v26 = vpack.c.bf16 %v490_v23, %v488_v22 }
 0x155   : > { %v479_v27 = vadd.f32 %v478_v25, %v350_v18  ;;  %v480_v28 = vpop.f32.mrb[5].mxu0  ;;  %v681_v19 = vrot.slane %v676_v17, %v680_v16 }
 0x156   : > { %v481_v30 = vadd.f32 %v480_v28, %v350_v18  ;;  %v482_v31 = vpop.f32.mrb[6].mxu0  ;;  %562 = vmatprep.subr.bf16.mxu1 %v500_v26  ;;  %v689_v18 = vunpack.c.0.s8 %v688_v15 }
 0x157   : > { %v483_v32 = vadd.f32 %v482_v31, %v355_v29  ;;  %v484_v33 = vpop.f32.mrb[7].mxu0  ;;  %563 = vmatpush1.bf16.msra.mxu1 %v499_v24  ;;  %v491_v35 = vmax.f32 %v479_v27, 0.0 }
 0x158   : > { %v485_v34 = vadd.f32 %v484_v33, %v355_v29  ;;  %v492_v37 = vmax.f32 %v481_v30, 0.0  ;;  %v692_v24 = vsub.s32 %v689_v18, %v679_v13 }
 0x159   : > { %v493_v36 = vmax.f32 %v483_v32, 0.0 }
 0x15a   : > { %v494_v38 = vmax.f32 %v485_v34, 0.0 }
 0x15b   : > { %v501_v39 = vpack.c.bf16 %v493_v36, %v491_v35 }
 0x15c   : > { %v502_v40 = vpack.c.bf16 %v494_v38, %v492_v37 }
 0x15e   : > { %564 = vmatprep.subr.bf16.mxu1 %v502_v40 }
 0x15f   : > { %565 = vmatpush1.bf16.msra.mxu1 %v501_v39 }
 0x162   : > { %793 = vmatmul.mubr.msk.bf16.vlgmr.msra.gmra.mrb[0].mxu1 %vm555_vm1, %v547_v41 }
 0x163   : > { %604 = vmatprep.mubr.bf16.mxu1 %v940_v3 }
 0x16a   : > { %794 = vmatmul.mubr.msk.bf16.gmra.mrb[4].mxu1 %vm555_vm1, %v548_v42 }
 0x16b   : > { %663 = vmatprep.mubr.bf16.mxu1 %v940_v3 }
 0x235   : > { %v596_v45 = vpop.f32.mrb[0].mxu1 }
 0x236   : > { %v597_v46 = vadd.f32 %v596_v45, %v510_v43  ;;  %v598_v47 = vpop.f32.mrb[1].mxu1 }
 0x237   : > { %v599_v48 = vadd.f32 %v598_v47, %v510_v43  ;;  %v600_v49 = vpop.f32.mrb[2].mxu1 }
 0x238   : > { %v601_v50 = vadd.f32 %v600_v49, %v515_v44  ;;  %v602_v51 = vpop.f32.mrb[3].mxu1  ;;  %v615_v54 = vmax.f32 %v597_v46, 0.0 }
 0x239   : > { %v603_v53 = vadd.f32 %v602_v51, %v515_v44  ;;  %v616_v56 = vmax.f32 %v599_v48, 0.0 }
 0x23a   : > { %v617_v55 = vmax.f32 %v601_v50, 0.0 }
 0x23b   : > { %v618_v57 = vmax.f32 %v603_v53, 0.0 }
 0x23c   : > { %v624_v58 = vpack.c.bf16 %v617_v55, %v615_v54 }
 0x23d   : > { %v625_v59 = vpack.c.bf16 %v618_v57, %v616_v56  ;;  %v606_v60 = vpop.f32.mrb[4].mxu1 }
 0x23e   : > { %v607_v61 = vadd.f32 %v606_v60, %v520_v52  ;;  %v608_v3 = vpop.f32.mrb[5].mxu1 }
 0x23f   : > { %v609_v63 = vadd.f32 %v608_v3, %v520_v52  ;;  %v610_v0 = vpop.f32.mrb[6].mxu1  ;;  %631 = vmatprep.subr.bf16.mxu1 %v625_v59 }
 0x240   : > { %v611_v1 = vadd.f32 %v610_v0, %v525_v62  ;;  %v612_v2 = vpop.f32.mrb[7].mxu1  ;;  %632 = vmatpush1.bf16.msra.mxu1 %v624_v58  ;;  %v619_v5 = vmax.f32 %v607_v61, 0.0 }
 0x241   : > { %v613_v4 = vadd.f32 %v612_v2, %v525_v62  ;;  %v620_v7 = vmax.f32 %v609_v63, 0.0 }
 0x242   : > { %v621_v6 = vmax.f32 %v611_v1, 0.0 }
 0x243   : > { %v622_v8 = vmax.f32 %v613_v4, 0.0 }
 0x244   : > { %v626_v9 = vpack.c.bf16 %v621_v6, %v619_v5 }
 0x245   : > { %v627_v10 = vpack.c.bf16 %v622_v8, %v620_v7 }
 0x247   : > { %633 = vmatprep.subr.bf16.mxu1 %v627_v10 }
 0x248   : > { %634 = vmatpush1.bf16.msra.mxu1 %v626_v9 }
 0x24b   : > { %795 = vmatmul.mubr.msk.bf16.vlgmr.msra.gmra.mrb[8].mxu1 %vm555_vm1, %v623_v11 }
 0x31e   : > { %v665_v20 = vpop.f32.mrb[8].mxu1 }
 0x31f   : > { %v682_v21 = vadd.f32 %v681_v19, %v665_v20  ;;  %v667_v22 = vpop.f32.mrb[9].mxu1 }
 0x320   : > { %v683_v23 = vadd.f32 %v681_v19, %v667_v22  ;;  %v669_v25 = vpop.f32.mrb[10].mxu1 }
 0x321   : > { %v670_v26 = vpop.f32.mrb[11].mxu1 }
 0x322   : > { %v686_v27 = vcombine.low %v682_v21, %v683_v23 }
 0x324   : > { %v693_v28 = vrot.slane %v686_v27, %v692_v24 }
 0x326   : > { %v700_v29 = vrot.slane %v693_v28, %v692_v24 }
 0x328   : > { %706 = vst.msk [vmem:[%s274_s15] sm:$0x3] %vm704_vm2, %v700_v29 }
 0x329   : > { %889 = shalt.err (!%p886_p3)
}
 0x32a   : > { %s890_s16 = scalar_lea.hbm %s1141_s20, 32  ;;  %s894_s9 = scalar_lea.hbm %s1190_s7, 64 }
 0x32b   : > { %p891_p4 = scmp.ne.s32.totalorder %s1141_s20, %s890_s16  ;;  %p895_p9 = scmp.lt.u32.totalorder %s1141_s20, %s1190_s7 }
 0x32c   : > { %p896_p10 = scmp.lt.u32.totalorder %s894_s9, %s890_s16  ;;  %p898_p12 = scmp.lt.u32.totalorder %s890_s16, %s1141_s20 }
 0x32d   : > { %p892_p7 = pnand %p891_p4, %p1021_p5 }
 0x32e   : > { %p897_p11 = por %p896_p10, %p895_p9 }
 0x32f   : > { %p893_p8 = pneg %p892_p7 }
 0x330   : > { %p899_p13 = por %p898_p12, %p897_p11 }
 0x332   : > { %p900_p0 = pnand %p899_p13, %p893_p8 }
 0x334   : > { %903 = shalt.err (!%p900_p0)
}
 0x335   : > { %830 = dma.vmem_to_hbm [thread:$0]  (%p1021_p5), %s1143_s17, 32, %s1141_s20, %s708_s21  }
 0x336 PF: > { %p836_p1 = scmp.ge.s32.totalorder %s938_s29, 2  ;;  %s734_s15 = sand.u32 1, %s926_s26  }
 0x337   : > { %s735_s18 = scalar_lea.sflag [#allocation4], %s734_s15 }
 0x338   : > { %p833_p2 = pnand %p836_p1, %p1025_p6 }
 0x33a   : > { %921 = dma.done.wait (!%p833_p2), %s735_s18, 32  }
 0x33b   : > { %923 = vsyncadd (!%p833_p2), %s735_s18, 4294967264  ;;  %p19_p3 = scmp.ge.s32.totalorder %s1009_s8, 4   ;;  %s1193_s26 = smov %s930_s27 }
 0x33c   : > { %s1194_s27 = smov %s934_s28  ;;  %s1195_s28 = smov %s1019_s11 }
 0x33d   : > { %s1196_s29 = smov %s1009_s8  ;;  %21 = sbr.rel (!%p19_p3) target bundleno = 6 (0x6), region = 83 }
 0x344   :  { %740 = vsyncpa [#allocation4], 1 }
 0x345   :  { %742 = vsyncpa [#allocation4 + $0x1], 1 }

</bundles_post_ra>
